<compile_context>
chip_gen: v5e
topology: v5e:2x2
jax: 0.10.0
libtpu: 0.0.40
codegen_flags: <defaults>
</compile_context>

<pallas_src>
import jax
import jax.numpy as jnp
import numpy as np
from jax import lax
from jax.experimental import pallas as pl
from jax.experimental.pallas import tpu as pltpu

# Small, module-consistent shapes.
B = 2            # batch
S = 8            # sequence length
H = 32           # hidden size (BERT hidden_size stand-in)
L = 5            # num_labels
LP = 128         # label dim padded to a full lane width (lane-dense logits store)
N = 4            # candidate spans per example (fixed; PyTorch allows ragged lists)
V = 50           # toy vocab size
VP = 64          # vocab padded to a multiple of 8 sublanes

BS = B * S                                   # 16  (multiple of 8)
BN = B * N                                   # 8   (multiple of 8)
CTRL_VALID = 2 * BS + 2 * BN + BN            # ids | mask | starts,ends | labels = 56
CTRL_ROWS = ((CTRL_VALID + 7) // 8) * 8      # 56 (already a multiple of 8)
WA_ROWS = ((VP + H + 1 + 7) // 8) * 8        # emb | enc_w | enc_b  -> 104
WB_ROWS = ((2 * H + 1 + 7) // 8) * 8         # cls_w | cls_b        -> 72


def fused_span_ner_kernel(ctrl_ref, wa_ref, wb_ref, logits_ref, loss_ref):
    """Whole-batch fused forward (single invocation, no grid).

    ctrl_ref   : VMEM (CTRL_ROWS, 1) int32 -- [ids | mask | start,end idx | labels]
    wa_ref     : VMEM (WA_ROWS, H)   f32   -- [emb (VP rows) | enc_w (H rows) | enc_b (1 row)]
    wb_ref     : VMEM (WB_ROWS, LP)  f32   -- [cls_w (2H rows) | cls_b (1 row)], lane-padded
    logits_ref : VMEM (BN, LP)       f32
    loss_ref   : SMEM (1, 1)         f32   -- batch-mean cross-entropy
    """
    f32 = jnp.float32
    hi = lax.Precision.HIGHEST

    # ---- unpack the single control DMA (all offsets are multiples of 8) ----
    ctrl = ctrl_ref[...]                                       # (CTRL_ROWS, 1)
    ids = ctrl[0:BS]                                           # (BS, 1) int32
    mask = ctrl[BS:2 * BS].astype(f32)                         # (BS, 1) 0/1
    se_idx = ctrl[2 * BS:2 * BS + 2 * BN]                      # (2BN, 1) pre-offset by b*S
    lab = ctrl[2 * BS + 2 * BN:2 * BS + 2 * BN + BN]           # (BN, 1)

    # ---- unpack pre-packed weight slabs ----
    emb = wa_ref[0:VP, :]                                      # (VP, H)
    enc_w = wa_ref[VP:VP + H, :]                               # (H, H)
    enc_b = wa_ref[VP + H:VP + H + 1, :]                       # (1, H)
    cls_w = wb_ref[0:2 * H, :]                                 # (2H, LP)
    cls_b = wb_ref[2 * H:2 * H + 1, :]                         # (1, LP)

    # ---- toy encoder (BERT stand-in): one-hot MXU embedding gather,
    #      dense + tanh, attention-mask zeroing ----
    oh_ids = (ids == lax.broadcasted_iota(jnp.int32, (BS, VP), 1)).astype(f32)
    x = jnp.dot(oh_ids, emb, precision=hi, preferred_element_type=f32)      # (BS, H)
    x = jnp.tanh(jnp.dot(x, enc_w, precision=hi, preferred_element_type=f32) + enc_b)
    seq = x * mask                                                           # (BS, H)

    # ---- span start/end gather via one-hot matmul (indices already + b*S) ----
    oh_se = (se_idx == lax.broadcasted_iota(jnp.int32, (2 * BN, BS), 1)).astype(f32)
    gathered = jnp.dot(oh_se, seq, precision=hi, preferred_element_type=f32)  # (2BN, H)
    start_emb = gathered[:BN]                                                 # (BN, H)
    end_emb = gathered[BN:]                                                   # (BN, H)

    # ---- span classifier: concat([start, end]) @ W + b == start@W[:H] + end@W[H:] + b
    #      (W/b lane-padded to LP -> unmasked, lane-dense logits store) ----
    logits = (jnp.dot(start_emb, cls_w[:H], precision=hi, preferred_element_type=f32) +
              jnp.dot(end_emb, cls_w[H:], precision=hi, preferred_element_type=f32) +
              cls_b)                                                          # (BN, LP)
    logits_ref[...] = logits

    # ---- vectorized cross entropy over all B*N spans (padded lanes masked out).
    #      Every example has N spans, so mean-of-per-example-means == global mean. ----
    lane = lax.broadcasted_iota(jnp.int32, (BN, LP), 1)
    masked = jnp.where(lane < L, logits, f32(-1e30))
    m = jnp.max(masked, axis=-1, keepdims=True)
    lse = m + jnp.log(jnp.sum(jnp.exp(masked - m), axis=-1, keepdims=True))
    oh_lab = (lab == lane).astype(f32)
    correct = jnp.sum(logits * oh_lab, axis=-1, keepdims=True)
    loss_ref[0, 0] = jnp.sum(lse - correct) / f32(BN)


def pack_params(params):
    """Pre-pad / pre-pack weights ONCE, outside the per-call path."""
    emb_pad = jnp.zeros((VP, H), jnp.float32).at[:V].set(params["emb"])
    wa_rows = VP + H + 1
    wa = jnp.concatenate(
        [emb_pad, params["enc_w"], params["enc_b"].reshape(1, H),
         jnp.zeros((WA_ROWS - wa_rows, H), jnp.float32)], axis=0)           # (104, 32)

    cls_w_pad = jnp.zeros((2 * H, LP), jnp.float32).at[:, :L].set(params["cls_w"])
    cls_b_pad = jnp.zeros((1, LP), jnp.float32).at[0, :L].set(params["cls_b"])
    wb_rows = 2 * H + 1
    wb = jnp.concatenate(
        [cls_w_pad, cls_b_pad,
         jnp.zeros((WB_ROWS - wb_rows, LP), jnp.float32)], axis=0)          # (72, 128)
    return wa, wb


@jax.jit
def span_ner_forward(input_ids, attention_mask, spans, labels, wa, wb):
    """Returns (total_loss scalar, logits [B, N, L])."""
    ids = input_ids.reshape(BS).astype(jnp.int32)
    mask_i = attention_mask.reshape(BS).astype(jnp.int32)        # 0/1 mask, exact as int
    offs = (jnp.arange(B, dtype=jnp.int32) * S)[:, None]         # (B, 1)
    start_flat = (spans[:, :, 0].astype(jnp.int32) + offs).reshape(BN)
    end_flat = (spans[:, :, 1].astype(jnp.int32) + offs).reshape(BN)
    lab = labels.reshape(BN).astype(jnp.int32)

    parts = [ids, mask_i, start_flat, end_flat, lab]
    pad = CTRL_ROWS - CTRL_VALID
    if pad:
        parts.append(jnp.zeros((pad,), jnp.int32))
    ctrl = jnp.concatenate(parts).reshape(CTRL_ROWS, 1)          # single control buffer

    logits_pad, loss = pl.pallas_call(
        fused_span_ner_kernel,
        in_specs=[
            pl.BlockSpec(memory_space=pltpu.MemorySpace.VMEM),   # packed control ints
            pl.BlockSpec(memory_space=pltpu.MemorySpace.VMEM),   # weight slab A (H lanes)
            pl.BlockSpec(memory_space=pltpu.MemorySpace.VMEM),   # weight slab B (LP lanes)
        ],
        out_specs=(
            pl.BlockSpec(memory_space=pltpu.MemorySpace.VMEM),
            pl.BlockSpec(memory_space=pltpu.MemorySpace.SMEM),
        ),
        out_shape=(
            jax.ShapeDtypeStruct((BN, LP), jnp.float32),
            jax.ShapeDtypeStruct((1, 1), jnp.float32),
        ),
    )(ctrl, wa, wb)

    logits = logits_pad[:, :L].reshape(B, N, L)
    total_loss = loss[0, 0]
    return total_loss, logits


# ---------------- pure-JAX reference ----------------

def toy_encoder_ref(input_ids, attention_mask, emb, enc_w, enc_b):
    x = emb[input_ids]
    x = jnp.tanh(jnp.dot(x, enc_w, precision=lax.Precision.HIGHEST) + enc_b)
    return x * attention_mask[..., None]


def reference(input_ids, attention_mask, spans, labels, params):
    seq = toy_encoder_ref(input_ids, attention_mask,
                          params["emb"], params["enc_w"], params["enc_b"])

    def one(seq_i, spans_i, labels_i):
        se = seq_i[spans_i[:, 0]]
        ee = seq_i[spans_i[:, 1]]
        emb = jnp.concatenate([se, ee], axis=-1)
        logits = jnp.dot(emb, params["cls_w"],
                         precision=lax.Precision.HIGHEST) + params["cls_b"]
        logp = jax.nn.log_softmax(logits, axis=-1)
        loss = -jnp.mean(jnp.take_along_axis(logp, labels_i[:, None], axis=-1))
        return logits, loss

    logits, losses = jax.vmap(one)(seq, spans, labels)
    return logits, jnp.mean(losses)


if __name__ == "__main__":
    key = jax.random.PRNGKey(0)
    k1, k2, k3, k4, k5, k6 = jax.random.split(key, 6)

    input_ids = jax.random.randint(k1, (B, S), 0, V)
    attention_mask = jnp.ones((B, S), jnp.float32)
    spans = jnp.sort(jax.random.randint(k2, (B, N, 2), 0, S), axis=-1).astype(jnp.int32)
    labels = jax.random.randint(k3, (B, N), 0, L).astype(jnp.int32)

    params = {
        "emb": 0.02 * jax.random.normal(k4, (V, H), jnp.float32),
        "enc_w": 0.02 * jax.random.normal(k5, (H, H), jnp.float32),
        "enc_b": jnp.zeros((H,), jnp.float32),
        "cls_w": 0.02 * jax.random.normal(k6, (2 * H, L), jnp.float32),
        "cls_b": jnp.zeros((L,), jnp.float32),
    }

    # Weight padding / packing happens once, outside the per-call jitted path.
    wa, wb = pack_params(params)
    wa, wb = jax.block_until_ready((wa, wb))

    total_loss, logits = span_ner_forward(input_ids, attention_mask, spans, labels, wa, wb)
    jax.block_until_ready((total_loss, logits))

    ref_logits, ref_loss = reference(input_ids, attention_mask, spans, labels, params)
    assert np.allclose(np.asarray(logits), np.asarray(ref_logits), rtol=1e-4, atol=1e-6), \
        "logits mismatch"
    assert np.allclose(float(total_loss), float(ref_loss), rtol=1e-4, atol=1e-6), \
        "loss mismatch"

    print("KERNEL_OK")
</pallas_src>

<mosaic_0001>
module attributes {stable_mosaic.version = 11 : i64} {
  func.func @fused_span_ner_kernel(%arg0: memref<56x1xi32, #tpu.memory_space<vmem>>, %arg1: memref<104x32xf32, #tpu.memory_space<vmem>>, %arg2: memref<72x128xf32, #tpu.memory_space<vmem>>, %arg3: memref<8x128xf32, #tpu.memory_space<vmem>>, %arg4: memref<1x1xf32, #tpu.memory_space<smem>>) attributes {dimension_semantics = [], scalar_prefetch = 0 : i64, scratch_operands = 0 : i64, tpu.core_type = #tpu.core_type<tc>} {
    %c0 = arith.constant 0 : index
    %c0_0 = arith.constant 0 : index
    %0 = vector.load %arg0[%c0, %c0_0] : memref<56x1xi32, #tpu.memory_space<vmem>>, vector<56x1xi32>
    %1 = vector.extract_strided_slice %0 {offsets = [0, 0], sizes = [16, 1], strides = [1, 1]} : vector<56x1xi32> to vector<16x1xi32>
    %2 = vector.extract_strided_slice %0 {offsets = [16, 0], sizes = [16, 1], strides = [1, 1]} : vector<56x1xi32> to vector<16x1xi32>
    %3 = arith.sitofp %2 : vector<16x1xi32> to vector<16x1xf32>
    %4 = vector.extract_strided_slice %0 {offsets = [32, 0], sizes = [16, 1], strides = [1, 1]} : vector<56x1xi32> to vector<16x1xi32>
    %5 = vector.extract_strided_slice %0 {offsets = [48, 0], sizes = [8, 1], strides = [1, 1]} : vector<56x1xi32> to vector<8x1xi32>
    %c0_1 = arith.constant 0 : index
    %c0_2 = arith.constant 0 : index
    %6 = vector.load %arg1[%c0_1, %c0_2] : memref<104x32xf32, #tpu.memory_space<vmem>>, vector<64x32xf32>
    %c64 = arith.constant 64 : index
    %c0_3 = arith.constant 0 : index
    %7 = vector.load %arg1[%c64, %c0_3] : memref<104x32xf32, #tpu.memory_space<vmem>>, vector<32x32xf32>
    %c96 = arith.constant 96 : index
    %c0_4 = arith.constant 0 : index
    %8 = vector.load %arg1[%c96, %c0_4] : memref<104x32xf32, #tpu.memory_space<vmem>>, vector<1x32xf32>
    %c0_5 = arith.constant 0 : index
    %c0_6 = arith.constant 0 : index
    %9 = vector.load %arg2[%c0_5, %c0_6] : memref<72x128xf32, #tpu.memory_space<vmem>>, vector<64x128xf32>
    %c64_7 = arith.constant 64 : index
    %c0_8 = arith.constant 0 : index
    %10 = vector.load %arg2[%c64_7, %c0_8] : memref<72x128xf32, #tpu.memory_space<vmem>>, vector<1x128xf32>
    %11 = tpu.iota {dimensions = array<i32: 1>} : vector<16x64xi32>
    %12 = vector.broadcast %1 : vector<16x1xi32> to vector<16x64xi32>
    %13 = arith.cmpi eq, %12, %11 : vector<16x64xi32>
    %14 = arith.extui %13 : vector<16x64xi1> to vector<16x64xi32>
    %15 = arith.sitofp %14 : vector<16x64xi32> to vector<16x64xf32>
    %cst = arith.constant dense<0.000000e+00> : vector<16x32xf32>
    %16 = tpu.matmul %15, %6, %cst {dimension_numbers = #tpu.dot_dimension_numbers<[1], [0], [0], [1], [0, 0, 1, 1], [], []>, precision = #tpu.contract_precision<fp32>} : vector<16x64xf32>, vector<64x32xf32>, vector<16x32xf32> -> vector<16x32xf32>
    %cst_9 = arith.constant dense<0.000000e+00> : vector<16x32xf32>
    %17 = tpu.matmul %16, %7, %cst_9 {dimension_numbers = #tpu.dot_dimension_numbers<[1], [0], [0], [1], [0, 0, 1, 1], [], []>, precision = #tpu.contract_precision<fp32>} : vector<16x32xf32>, vector<32x32xf32>, vector<16x32xf32> -> vector<16x32xf32>
    %18 = vector.broadcast %8 : vector<1x32xf32> to vector<16x32xf32>
    %19 = arith.addf %17, %18 : vector<16x32xf32>
    %20 = math.tanh %19 : vector<16x32xf32>
    %21 = vector.broadcast %3 : vector<16x1xf32> to vector<16x32xf32>
    %22 = arith.mulf %20, %21 : vector<16x32xf32>
    %23 = tpu.iota {dimensions = array<i32: 1>} : vector<16x16xi32>
    %24 = vector.broadcast %4 : vector<16x1xi32> to vector<16x16xi32>
    %25 = arith.cmpi eq, %24, %23 : vector<16x16xi32>
    %26 = arith.extui %25 : vector<16x16xi1> to vector<16x16xi32>
    %27 = arith.sitofp %26 : vector<16x16xi32> to vector<16x16xf32>
    %cst_10 = arith.constant dense<0.000000e+00> : vector<16x32xf32>
    %28 = tpu.matmul %27, %22, %cst_10 {dimension_numbers = #tpu.dot_dimension_numbers<[1], [0], [0], [1], [0, 0, 1, 1], [], []>, precision = #tpu.contract_precision<fp32>} : vector<16x16xf32>, vector<16x32xf32>, vector<16x32xf32> -> vector<16x32xf32>
    %29 = vector.extract_strided_slice %28 {offsets = [0, 0], sizes = [8, 32], strides = [1, 1]} : vector<16x32xf32> to vector<8x32xf32>
    %30 = vector.extract_strided_slice %28 {offsets = [8, 0], sizes = [8, 32], strides = [1, 1]} : vector<16x32xf32> to vector<8x32xf32>
    %31 = vector.extract_strided_slice %9 {offsets = [0, 0], sizes = [32, 128], strides = [1, 1]} : vector<64x128xf32> to vector<32x128xf32>
    %cst_11 = arith.constant dense<0.000000e+00> : vector<8x128xf32>
    %32 = tpu.matmul %29, %31, %cst_11 {dimension_numbers = #tpu.dot_dimension_numbers<[1], [0], [0], [1], [0, 0, 1, 1], [], []>, precision = #tpu.contract_precision<fp32>} : vector<8x32xf32>, vector<32x128xf32>, vector<8x128xf32> -> vector<8x128xf32>
    %33 = vector.extract_strided_slice %9 {offsets = [32, 0], sizes = [32, 128], strides = [1, 1]} : vector<64x128xf32> to vector<32x128xf32>
    %cst_12 = arith.constant dense<0.000000e+00> : vector<8x128xf32>
    %34 = tpu.matmul %30, %33, %cst_12 {dimension_numbers = #tpu.dot_dimension_numbers<[1], [0], [0], [1], [0, 0, 1, 1], [], []>, precision = #tpu.contract_precision<fp32>} : vector<8x32xf32>, vector<32x128xf32>, vector<8x128xf32> -> vector<8x128xf32>
    %35 = arith.addf %32, %34 : vector<8x128xf32>
    %36 = vector.broadcast %10 : vector<1x128xf32> to vector<8x128xf32>
    %37 = arith.addf %35, %36 : vector<8x128xf32>
    %c0_13 = arith.constant 0 : index
    %c0_14 = arith.constant 0 : index
    %38 = vector.load %arg3[%c0_13, %c0_14] : memref<8x128xf32, #tpu.memory_space<vmem>>, vector<8x128xf32>
    tpu.vector_store %arg3[%c0_13, %c0_14], %37 {strides = array<i32>} : memref<8x128xf32, #tpu.memory_space<vmem>>, vector<8x128xf32>,
    %39 = tpu.iota {dimensions = array<i32: 1>} : vector<8x128xi32>
    %c5_i32 = arith.constant 5 : i32
    %40 = vector.broadcast %c5_i32 : i32 to vector<8x128xi32>
    %41 = arith.cmpi slt, %39, %40 : vector<8x128xi32>
    %cst_15 = arith.constant -1.000000e+30 : f32
    %42 = vector.broadcast %cst_15 : f32 to vector<8x128xf32>
    %43 = arith.select %41, %37, %42 : vector<8x128xi1>, vector<8x128xf32>
    %cst_16 = arith.constant dense<0xFF800000> : vector<8xf32>
    %44 = vector.multi_reduction <maximumf>, %43, %cst_16 [1] : vector<8x128xf32> to vector<8xf32>
    %45 = vector.shape_cast %44 : vector<8xf32> to vector<8x1xf32>
    %46 = vector.broadcast %45 : vector<8x1xf32> to vector<8x128xf32>
    %47 = arith.subf %43, %46 : vector<8x128xf32>
    %48 = math.exp %47 : vector<8x128xf32>
    %cst_17 = arith.constant dense<0.000000e+00> : vector<8xf32>
    %49 = vector.multi_reduction <add>, %48, %cst_17 [1] : vector<8x128xf32> to vector<8xf32>
    %50 = vector.shape_cast %49 : vector<8xf32> to vector<8x1xf32>
    %51 = math.log %50 : vector<8x1xf32>
    %52 = arith.addf %45, %51 : vector<8x1xf32>
    %53 = vector.broadcast %5 : vector<8x1xi32> to vector<8x128xi32>
    %54 = arith.cmpi eq, %53, %39 : vector<8x128xi32>
    %55 = arith.extui %54 : vector<8x128xi1> to vector<8x128xi32>
    %56 = arith.sitofp %55 : vector<8x128xi32> to vector<8x128xf32>
    %57 = arith.mulf %37, %56 : vector<8x128xf32>
    %cst_18 = arith.constant dense<0.000000e+00> : vector<8xf32>
    %58 = vector.multi_reduction <add>, %57, %cst_18 [1] : vector<8x128xf32> to vector<8xf32>
    %59 = vector.shape_cast %58 : vector<8xf32> to vector<8x1xf32>
    %60 = arith.subf %52, %59 : vector<8x1xf32>
    %61 = vector.shape_cast %60 : vector<8x1xf32> to vector<1x8x1xf32>
    %cst_19 = arith.constant dense<0.000000e+00> : vector<1xf32>
    %62 = vector.multi_reduction <add>, %61, %cst_19 [1, 2] : vector<1x8x1xf32> to vector<1xf32>
    %63 = vector.shape_cast %62 : vector<1xf32> to vector<1x1x1xf32>
    %64 = vector.extract %63[0, 0, 0] : f32 from vector<1x1x1xf32>
    %cst_20 = arith.constant 8.000000e+00 : f32
    %65 = arith.divf %64, %cst_20 : f32
    %c0_21 = arith.constant 0 : index
    %c0_22 = arith.constant 0 : index
    %66 = memref.load %arg4[%c0_21, %c0_22] : memref<1x1xf32, #tpu.memory_space<smem>>
    memref.store %65, %arg4[%c0_21, %c0_22] : memref<1x1xf32, #tpu.memory_space<smem>>
    return
  }
}

</mosaic_0001>

<bundles_post_ra>
// kernel: span_ner_forward.1
= control target key start
LH: loop header
LB: loop body
LE: loop exit
PB: predicated region body
PF: predicated region fallthrough
CT: control target
= control target key end

     0   :  { %10 = vsyncpa [#allocation3], 0  ;;  %v1320_v2 = vmov 0   ;;  %s1592_s0 = inlined_call_operand.vmem [shape: s32[56,1], index: 0, kind: input, shape index: {}]   ;;  %s1593_s1 = inlined_call_operand.vmem [shape: f32[104,32], index: 1, kind: input, shape index: {}]   ;;  %s1594_s2 = inlined_call_operand.vmem [shape: f32[72,128], index: 2, kind: input, shape index: {}]   ;;  %s1595_s3 = inlined_call_operand.hbm [shape: f32[8,128], index: 3, kind: output, shape index: {0}]   ;;  %s1596_s4 = inlined_call_operand.hbm [shape: f32[1,1], index: 4, kind: output, shape index: {1}]  }
   0x1   :  { %v18_v0 = vld [vmem:[%s1592_s0] sm:$0xff]  ;;  %v34_v1 = vld [vmem:[%s1593_s1 + $0x38] sm:$0xff]  ;;  %1265 = vset.pattern.permute.xlu0 %v1320_v2  ;;  %v33_v4 = vld [vmem:[%s1593_s1 + $0x30] sm:$0xff]  ;;  %1266 = vset.pattern.permute.xlu1 %v1320_v2 }
   0x2   :  { %v1356_v3 = vand.u32 4294901760, %v34_v1  ;;  %v32_v5 = vld [vmem:[%s1593_s1 + $0x28] sm:$0xff]  ;;  %v31_v6 = vld [vmem:[%s1593_s1 + $0x20] sm:$0xff]  ;;  %52 = vperm.xlu0 %1265, %v18_v0   ;;  %v1367_v7 = vand.u32 4294901760, %v33_v4  ;;  %v30_v10 = vld [vmem:[%s1593_s1 + $0x18] sm:$0xff]  ;;  %1267 = vset.pattern.permute.xlu2 %v1320_v2 }
   0x3   :  { %v1369_v8 = vand.u32 4294901760, %v32_v5  ;;  %v1371_v9 = vand.u32 4294901760, %v31_v6  ;;  %v29_v11 = vld [vmem:[%s1593_s1 + $0x10] sm:$0xff]  ;;  %v28_v12 = vld [vmem:[%s1593_s1 + $0x8] sm:$0xff]  ;;  %v1386_v14 = vand.u32 4294901760, %v30_v10 }
   0x4   :  { %v1383_v13 = vsub.f32 %v34_v1, %v1356_v3  ;;  %228 = vmatpush.msra.mxu3 %v1356_v3  ;;  %79 = vmatpush.msra.mxu0 %v1356_v3  ;;  %v1389_v15 = vand.u32 4294901760, %v29_v11  ;;  %v1391_v16 = vand.u32 4294901760, %v28_v12  ;;  %v1394_v17 = vsub.f32 %v33_v4, %v1367_v7 }
   0x5   :  { %v1397_v18 = vsub.f32 %v32_v5, %v1369_v8  ;;  %v1400_v19 = vsub.f32 %v31_v6, %v1371_v9 }
   0x6   :  { %11 = vsyncpa [#allocation4], 0  ;;  %v121_v20 = vand.u32 4294901760, %v1383_v13  ;;  %186 = vmatpush.msra.mxu2 %v1383_v13  ;;  %230 = vmatpush.msra.mxu3 %v1367_v7  ;;  %v1406_v21 = vsub.f32 %v30_v10, %v1386_v14  ;;  %v1409_v22 = vsub.f32 %v29_v11, %v1389_v15  ;;  %v127_v23 = vand.u32 4294901760, %v1394_v17  ;;  %v19_v26 = vld [vmem:[%s1592_s0 + $0x8] sm:$0xff]  ;;  %v27_v45 = vld [vmem:[%s1593_s1] sm:$0xff] }
   0x7   :  { %v133_v24 = vand.u32 4294901760, %v1397_v18  ;;  %v139_v25 = vand.u32 4294901760, %v1400_v19  ;;  %81 = vmatpush.msra.mxu0 %v1367_v7  ;;  %v156_v29 = vsub.f32 %v28_v12, %v1391_v16  ;;  %v92_v46 = vand.u32 4294901760, %v27_v45  ;;  %v38_v4 = vld [vmem:[%s1593_s1 + $0x58] sm:$0xff]  ;;  %v37_v6 = vld [vmem:[%s1593_s1 + $0x50] sm:$0xff]  ;;  %s1215_s20 = sshll.u32 %s1595_s3, 4  ;;  %s1216_s20 = int_to_ptr.hbm [resolvable:$true] %s1215_s20 }
   0x8   :  { %v122_v27 = vsub.f32 %v1383_v13, %v121_v20  ;;  %189 = vmatpush.msra.mxu2 %v1394_v17  ;;  %v145_v28 = vand.u32 4294901760, %v1406_v21  ;;  %232 = vmatpush.msra.mxu3 %v1369_v8  ;;  %v128_v30 = vsub.f32 %v1394_v17, %v127_v23  ;;  %v151_v34 = vand.u32 4294901760, %v1409_v22  ;;  %v35_v13 = vld [vmem:[%s1593_s1 + $0x40] sm:$0xff]  ;;  %s1322_s21 = smov [#allocation2]   ;;  %s1224_s24 = sshll.u32 %s1596_s4, 4  ;;  %s1225_s24 = int_to_ptr.hbm [resolvable:$true] %s1224_s24 }
   0x9   :  { %v134_v31 = vsub.f32 %v1397_v18, %v133_v24  ;;  %83 = vmatpush.msra.mxu0 %v1369_v8  ;;  %v140_v33 = vsub.f32 %v1400_v19, %v139_v25  ;;  %v157_v38 = vand.u32 4294901760, %v156_v29  ;;  %v162_v47 = vsub.f32 %v27_v45, %v92_v46  ;;  %s1213_s22 = sshll.u32 %s1322_s21, 4  ;;  %s1324_s28 = smov [#allocation5]   ;;  %s1214_s22 = int_to_ptr.vmem [resolvable:$true] %s1213_s22 }
   0xa   :  { %v123_v32 = vand.u32 4294901760, %v122_v27  ;;  %192 = vmatpush.msra.mxu2 %v1397_v18  ;;  %234 = vmatpush.msra.mxu3 %v1371_v9  ;;  %v129_v35 = vand.u32 4294901760, %v128_v30  ;;  %v146_v37 = vsub.f32 %v1406_v21, %v145_v28  ;;  %v152_v40 = vsub.f32 %v1409_v22, %v151_v34 }
   0xb   :  { %55 = vperm.xlu0 %1265, %v19_v26   ;;  %85 = vmatpush.msra.mxu0 %v1371_v9  ;;  %v135_v36 = vand.u32 4294901760, %v134_v31  ;;  %v141_v39 = vand.u32 4294901760, %v140_v33  ;;  %v158_v42 = vsub.f32 %v156_v29, %v157_v38  ;;  %v163_v48 = vand.u32 4294901760, %v162_v47 }
   0xc   :  { %124 = vmatpush.msra.mxu1 %v123_v32  ;;  %195 = vmatpush.msra.mxu2 %v1400_v19  ;;  %v147_v41 = vand.u32 4294901760, %v146_v37  ;;  %v153_v43 = vand.u32 4294901760, %v152_v40  ;;  %v49_v51 = vlaneseq  ;;  %vm63_vm0 = vcmask 523264  }
   0xd   :  { %236 = vmatpush.msra.mxu3 %v1386_v14  ;;  %87 = vmatpush.msra.mxu0 %v1386_v14  ;;  %v159_v44 = vand.u32 4294901760, %v158_v42  ;;  %v164_v49 = vsub.f32 %v162_v47, %v163_v48  ;;  %v1321_v54 = vmov 0.0   ;;  %v358_v5 = vand.u32 4294901760, %v38_v4 }
   0xe   :  { %130 = vmatpush.msra.mxu1 %v129_v35  ;;  %198 = vmatpush.msra.mxu2 %v1406_v21  ;;  %v1452_v52 = vand.u32 127, %v49_v51  ;;  %v364_v17 = vand.u32 4294901760, %v35_v13  ;;  %vm339_vm3 = vcmask 261120   ;;  %vm588_vm5 = vcmask 130048  }
   0xf   :  { %238 = vmatpush.msra.mxu3 %v1389_v15  ;;  %89 = vmatpush.msra.mxu0 %v1389_v15  ;;  %v165_v50 = vand.u32 4294901760, %v164_v49  ;;  %vm1186_vm9 = vcmask 7168  }
  0x10   :  { %136 = vmatpush.msra.mxu1 %v135_v36  ;;  %201 = vmatpush.msra.mxu2 %v1409_v22  ;;  %v414_v21 = vsub.f32 %v35_v13, %v364_v17  ;;  %vm1164_vm8 = vcmp.lt.s32.totalorder %v1452_v52, 5 }
  0x11   :  { %240 = vmatpush.msra.mxu3 %v1391_v16  ;;  %91 = vmatpush.msra.mxu0 %v1391_v16 }
  0x12   :  { %142 = vmatpush.msra.mxu1 %v141_v39  ;;  %204 = vmatpush.msra.mxu2 %v156_v29 }
  0x13   :  { %242 = vmatpush.msra.mxu3 %v92_v46  ;;  %93 = vmatpush.msra.mxu0 %v92_v46 }
  0x14   :  { %148 = vmatpush.msra.mxu1 %v147_v41  ;;  %207 = vmatpush.msra.mxu2 %v162_v47 }
  0x15   :  { %267 = vmatpush.msrb.mxu0 %v121_v20 }
  0x16   :  { %154 = vmatpush.msra.mxu1 %v153_v43  ;;  %359 = vmatpush.msrb.mxu2 %v358_v5 }
  0x17   :  { %271 = vmatpush.msrb.mxu0 %v127_v23 }
  0x18   :  { %160 = vmatpush.msra.mxu1 %v159_v44 }
  0x19   :  { %275 = vmatpush.msrb.mxu0 %v133_v24  ;;  %v415_v24 = vand.u32 4294901760, %v414_v21 }
  0x1a   :  { %166 = vmatpush.msra.mxu1 %v165_v50  ;;  %v21_v50 = vld [vmem:[%s1592_s0 + $0x18] sm:$0xff] }
  0x1b   :  { %279 = vmatpush.msrb.mxu0 %v139_v25  ;;  %v416_v26 = vsub.f32 %v414_v21, %v415_v24 }
  0x1c   :  { %314 = vmatpush.msrb.mxu1 %v1356_v3 }
  0x1d   :  { %283 = vmatpush.msrb.mxu0 %v145_v28  ;;  %v417_v27 = vand.u32 4294901760, %v416_v26 }
  0x1e   :  { %316 = vmatpush.msrb.mxu1 %v1367_v7  ;;  %v396_v7 = vsub.f32 %v38_v4, %v358_v5 }
  0x1f   :  { %287 = vmatpush.msrb.mxu0 %v151_v34 }
  0x20   :  { %318 = vmatpush.msrb.mxu1 %v1369_v8  ;;  %v360_v8 = vand.u32 4294901760, %v37_v6  ;;  %v397_v10 = vand.u32 4294901760, %v396_v7 }
  0x21   :  { %291 = vmatpush.msrb.mxu0 %v157_v38 }
  0x22   :  { %320 = vmatpush.msrb.mxu1 %v1371_v9  ;;  %v36_v9 = vld [vmem:[%s1593_s1 + $0x48] sm:$0xff]  ;;  %v402_v11 = vsub.f32 %v37_v6, %v360_v8  ;;  %361 = vmatpush.msrb.mxu2 %v360_v8  ;;  %v24_v6 = vld [vmem:[%s1592_s0 + $0x30] sm:$0xff] }
  0x23   :  { %295 = vmatpush.msrb.mxu0 %v163_v48  ;;  %v362_v12 = vand.u32 4294901760, %v36_v9 }
  0x24   :  { %322 = vmatpush.msrb.mxu1 %v1386_v14  ;;  %v398_v14 = vsub.f32 %v396_v7, %v397_v10 }
  0x25   :  { %363 = vmatpush.msrb.mxu2 %v362_v12 }
  0x26   :  { %324 = vmatpush.msrb.mxu1 %v1389_v15  ;;  %v403_v15 = vand.u32 4294901760, %v402_v11  ;;  %v399_v18 = vand.u32 4294901760, %v398_v14 }
  0x27   :  { %365 = vmatpush.msrb.mxu2 %v364_v17 }
  0x28   :  { %326 = vmatpush.msrb.mxu1 %v1391_v16  ;;  %v408_v16 = vsub.f32 %v36_v9, %v362_v12  ;;  %v404_v19 = vsub.f32 %v402_v11, %v403_v15  ;;  %400 = vmatpush.msrb.mxu3 %v399_v18 }
  0x2a   :  { %328 = vmatpush.msrb.mxu1 %v92_v46  ;;  %v409_v20 = vand.u32 4294901760, %v408_v16  ;;  %v405_v22 = vand.u32 4294901760, %v404_v19 }
  0x2c   :  { %v410_v23 = vsub.f32 %v408_v16, %v409_v20  ;;  %406 = vmatpush.msrb.mxu3 %v405_v22 }
  0x2e   :  { %v411_v25 = vand.u32 4294901760, %v410_v23 }
  0x30   :  { %412 = vmatpush.msrb.mxu3 %v411_v25 }
  0x32   :  { %418 = vmatpush.msrb.mxu3 %v417_v27 }
  0x74   :  { %v53_v53 = vpop.permute.xlu0 %52 }
  0x75   :  { %vm57_vm1 = vcmp.eq.s32.totalorder %v53_v53, %v1452_v52  ;;  %v26_v53 = vcvt.s32.f32 %v21_v50 }
  0x76   :  { %v1239_v55 = vsel %vm57_vm1, 1.0, %v1321_v54 }
  0x77   :  { %1241 = vmatmul.msk.f32.vlgmr.msra.gmra.mxu1 %vm63_vm0, %v1239_v55  ;;  %v65_v56 = vsel %vm63_vm0, %v1239_v55, 0  ;;  %571 = vperm.xlu1 %1266, %v26_v53  }
  0x78   :  { %v95_v57 = vsub.f32 %v65_v56, %v65_v56  ;;  %476 = vmatpush.msra.mxu1 %v358_v5 }
  0x7a   :  { %210 = vmatmul.f32.vlgmr.msra.gmra.mxu2 %v95_v57  ;;  %v96_v58 = vand.u32 4294901760, %v95_v57  ;;  %478 = vmatpush.msra.mxu1 %v360_v8 }
  0x7b   :  { %511 = vmatpush.msra.mxu2 %v397_v10 }
  0x7c   :  { %246 = vmatmul.f32.vlgmr.msra.gmra.mxu3 %v96_v58  ;;  %v97_v60 = vsub.f32 %v95_v57, %v96_v58  ;;  %480 = vmatpush.msra.mxu1 %v362_v12 }
  0x7d   :  { %v56_v59 = vpop.permute.xlu0 %55  ;;  %515 = vmatpush.msra.mxu2 %v403_v15  ;;  %546 = vmatpush.msra.mxu3 %v358_v5 }
  0x7e   :  { %vm58_vm2 = vcmp.eq.s32.totalorder %v56_v59, %v1452_v52  ;;  %v98_v62 = vand.u32 4294901760, %v97_v60  ;;  %482 = vmatpush.msra.mxu1 %v364_v17  ;;  %v20_v60 = vld [vmem:[%s1592_s0 + $0x10] sm:$0xff] }
  0x7f   :  { %v1240_v61 = vsel %vm58_vm2, 1.0, %v1321_v54  ;;  %519 = vmatpush.msra.mxu2 %v409_v20  ;;  %548 = vmatpush.msra.mxu3 %v360_v8  ;;  %v1268_v8 = vld [vmem:[%s1593_s1 + $0x60] ss:$0 sm:$0xff] }
  0x80   :  { %1242 = vmatmul.msk.f32.gmra.mxu1 %vm63_vm0, %v1240_v61  ;;  %v68_v63 = vsel %vm63_vm0, %v1240_v61, 0  ;;  %99 = vmatmul.f32.vlgmr.msra.gmra.mxu0 %v98_v62 }
  0x81   :  { %v103_v0 = vsub.f32 %v68_v63, %v68_v63  ;;  %442 = vmatpush.msra.mxu0 %v396_v7  ;;  %523 = vmatpush.msra.mxu2 %v415_v24 }
  0x82   :  { %550 = vmatpush.msra.mxu3 %v362_v12 }
  0x83   :  { %215 = vmatmul.f32.gmra.mxu2 %v103_v0  ;;  %v104_v1 = vand.u32 4294901760, %v103_v0  ;;  %445 = vmatpush.msra.mxu0 %v402_v11 }
  0x84   :  { %552 = vmatpush.msra.mxu3 %v364_v17 }
  0x85   :  { %252 = vmatmul.f32.gmra.mxu3 %v104_v1  ;;  %v105_v2 = vsub.f32 %v103_v0, %v104_v1  ;;  %448 = vmatpush.msra.mxu0 %v408_v16  ;;  %v25_v0 = vcvt.s32.f32 %v20_v60  ;;  %v23_v1 = vld [vmem:[%s1592_s0 + $0x28] sm:$0xff] }
  0x87   :  { %v106_v3 = vand.u32 4294901760, %v105_v2  ;;  %451 = vmatpush.msra.mxu0 %v414_v21  ;;  %566 = vperm.xlu1 %1266, %v25_v0   ;;  %v47_v0 = vld [vmem:[%s1594_s2 + $0x38] sm:$0xff] }
  0x88   :  { %1245 = vmatmul.msk.f32.vlgmr.msrb.gmra.mxu1 %vm63_vm0, %v1239_v55 }
  0x89   :  { %107 = vmatmul.f32.gmra.mxu0 %v106_v3 }
  0x8f   :  { %1177 = vperm.xlu1 %1266, %v24_v6  }
  0x90   :  { %1246 = vmatmul.msk.f32.gmra.mxu1 %vm63_vm0, %v1240_v61 }
  0x91   :  { %1243 = vmatmul.msk.f32.vlgmr.msrb.gmra.mxu0 %vm63_vm0, %v1239_v55  ;;  %v22_v55 = vld [vmem:[%s1592_s0 + $0x20] sm:$0xff] }
  0x92   :  { %577 = vperm.xlu2 %1267, %v22_v55  }
  0x99   :  { %1244 = vmatmul.msk.f32.gmra.mxu0 %vm63_vm0, %v1240_v61 }
  0x9a   :  { %580 = vperm.xlu2 %1267, %v23_v1   ;;  %v800_v1 = vand.u32 4294901760, %v47_v0 }
  0xe9   :  { %v572_v24 = vpop.permute.xlu1 %571 }
  0xec   :  { %v578_v20 = vpop.permute.xlu2 %577 }
  0xed   :  { %vm582_vm4 = vcmp.eq.s32.totalorder %v578_v20, %v1452_v52 }
  0xf4   :  { %v169_v28 = vpop.f32.mrf.mxu1 }
  0xfd   :  { %v100_v29 = vpop.f32.mrf.mxu0  ;;  %v173_v30 = vpop.f32.mrf.mxu1 }
  0xfe   :  { %v170_v31 = vadd.f32 %v169_v28, %v100_v29  ;;  %v211_v32 = vpop.f32.mrf.mxu2  ;;  %v1247_v28 = vsel %vm582_vm4, 1.0, %v1321_v54 }
  0xff   :  { %v247_v35 = vpop.f32.mrf.mxu3 }
 0x100   :  { %v212_v34 = vadd.f32 %v211_v32, %v170_v31  ;;  %v590_v32 = vsel %vm588_vm5, %v1247_v28, 0 }
 0x102   :  { %v248_v36 = vadd.f32 %v247_v35, %v212_v34  ;;  %v581_v34 = vpop.permute.xlu2 %580 }
 0x103   :  { %vm583_vm6 = vcmp.eq.s32.totalorder %v581_v34, %v1452_v52 }
 0x105   :  { %v331_v38 = vpop.f32.mrf.mxu1 }
 0x106   :  { %v108_v33 = vpop.f32.mrf.mxu0  ;;  %v216_v41 = vpop.f32.mrf.mxu2 }
 0x107   :  { %v174_v37 = vadd.f32 %v173_v30, %v108_v33 }
 0x108   :  { %v253_v45 = vpop.f32.mrf.mxu3 }
 0x109   :  { %v217_v42 = vadd.f32 %v216_v41, %v174_v37  ;;  %v1248_v41 = vsel %vm583_vm6, 1.0, %v1321_v54 }
 0x10b   :  { %v254_v47 = vadd.f32 %v253_v45, %v217_v42 }
 0x10d   :  { %v335_v56 = vpop.f32.mrf.mxu1 }
 0x10e   :  { %v298_v39 = vpop.f32.mrf.mxu0 }
 0x10f   :  { %v299_v40 = vadd.f32 %v298_v39, %v248_v36  ;;  %v614_v39 = vsub.f32 %v590_v32, %v590_v32  ;;  %v41_v32 = vld [vmem:[%s1594_s2 + $0x8] sm:$0xff] }
 0x110   :  { %v1542_v34 = vand.u32 4294901760, %v41_v32 }
 0x111   :  { %v332_v43 = vadd.f32 %v331_v38, %v299_v40  ;;  %v567_v38 = vpop.permute.xlu1 %566  ;;  %v615_v42 = vand.u32 4294901760, %v614_v39 }
 0x113   :  { %v341_v44 = vsel %vm339_vm3, %v332_v43, 0 }
 0x114   :  { %v366_v46 = vand.u32 4294901760, %v341_v44 }
 0x116   :  { %v367_v48 = vsub.f32 %v341_v44, %v366_v46  ;;  %v302_v49 = vpop.f32.mrf.mxu0  ;;  %420 = vmatmul.f32.vlgmr.msrb.gmra.mxu3 %v366_v46  ;;  %v593_v44 = vsel %vm588_vm5, %v1248_v41, 0 }
 0x117   :  { %v303_v51 = vadd.f32 %v302_v49, %v254_v47  ;;  %v622_v49 = vsub.f32 %v593_v44, %v593_v44 }
 0x118   :  { %454 = vmatmul.f32.vlgmr.msra.gmra.mxu0 %v367_v48  ;;  %v368_v57 = vand.u32 4294901760, %v367_v48 }
 0x119   :  { %v336_v58 = vadd.f32 %v335_v56, %v303_v51  ;;  %v623_v56 = vand.u32 4294901760, %v622_v49 }
 0x11a   :  { %486 = vmatmul.f32.vlgmr.msra.gmra.mxu1 %v368_v57  ;;  %v369_v59 = vsub.f32 %v367_v48, %v368_v57 }
 0x11b   :  { %v344_v61 = vsel %vm339_vm3, %v336_v58, 0  ;;  %v624_v60 = vsub.f32 %v622_v49, %v623_v56 }
 0x11c   :  { %v374_v62 = vand.u32 4294901760, %v344_v61  ;;  %v370_v63 = vand.u32 4294901760, %v369_v59 }
 0x11e   :  { %371 = vmatmul.f32.vlgmr.msrb.gmra.mxu2 %v370_v63  ;;  %424 = vmatmul.f32.gmra.mxu3 %v374_v62  ;;  %v375_v2 = vsub.f32 %v344_v61, %v374_v62  ;;  %v625_v63 = vand.u32 4294901760, %v624_v60 }
 0x120   :  { %459 = vmatmul.f32.gmra.mxu0 %v375_v2  ;;  %v376_v3 = vand.u32 4294901760, %v375_v2 }
 0x122   :  { %492 = vmatmul.f32.gmra.mxu1 %v376_v3  ;;  %v377_v4 = vsub.f32 %v375_v2, %v376_v3  ;;  %v46_v2 = vld [vmem:[%s1594_s2 + $0x30] sm:$0xff]  ;;  %v830_v3 = vsub.f32 %v47_v0, %v800_v1 }
 0x124   :  { %v378_v5 = vand.u32 4294901760, %v377_v4  ;;  %v802_v4 = vand.u32 4294901760, %v46_v2  ;;  %v831_v6 = vand.u32 4294901760, %v830_v3 }
 0x126   :  { %379 = vmatmul.f32.gmra.mxu2 %v378_v5  ;;  %554 = vmatmul.f32.vlgmr.msra.gmra.mxu3 %v366_v46  ;;  %v45_v5 = vld [vmem:[%s1594_s2 + $0x28] sm:$0xff] }
 0x12e   :  { %525 = vmatmul.f32.vlgmr.msra.gmra.mxu2 %v366_v46  ;;  %558 = vmatmul.f32.gmra.mxu3 %v374_v62  ;;  %v616_v46 = vsub.f32 %v614_v39, %v615_v42 }
 0x130   :  { %v617_v51 = vand.u32 4294901760, %v616_v46 }
 0x136   :  { %529 = vmatmul.f32.gmra.mxu2 %v374_v62 }
 0x195   :  { %v455_v13 = vpop.f32.mrf.mxu0 }
 0x197   :  { %v487_v17 = vpop.f32.mrf.mxu1 }
 0x199   :  { %v421_v7 = vpop.f32.mrf.mxu3 }
 0x19d   :  { %v460_v25 = vpop.f32.mrf.mxu0 }
 0x19f   :  { %v493_v29 = vpop.f32.mrf.mxu1 }
 0x1a1   :  { %v372_v9 = vpop.f32.mrf.mxu2  ;;  %v425_v11 = vpop.f32.mrf.mxu3 }
 0x1a2   :  { %v373_v10 = vadd.f32 %v1268_v8, %v372_v9  ;;  %v44_v9 = vld [vmem:[%s1594_s2 + $0x20] sm:$0xff] }
 0x1a4   :  { %v422_v12 = vadd.f32 %v421_v7, %v373_v10  ;;  %v836_v7 = vsub.f32 %v46_v2, %v802_v4  ;;  %v832_v10 = vsub.f32 %v830_v3, %v831_v6 }
 0x1a6   :  { %v456_v16 = vadd.f32 %v455_v13, %v422_v12  ;;  %v806_v13 = vand.u32 4294901760, %v44_v9 }
 0x1a8   :  { %v488_v19 = vadd.f32 %v487_v17, %v456_v16 }
 0x1a9   :  { %v380_v14 = vpop.f32.mrf.mxu2  ;;  %v555_v21 = vpop.f32.mrf.mxu3 }
 0x1aa   :  { %v381_v15 = vadd.f32 %v1268_v8, %v380_v14  ;;  %v804_v8 = vand.u32 4294901760, %v45_v5 }
 0x1ac   :  { %v426_v18 = vadd.f32 %v425_v11, %v381_v15  ;;  %v837_v11 = vand.u32 4294901760, %v836_v7  ;;  %v842_v12 = vsub.f32 %v45_v5, %v804_v8  ;;  %v833_v15 = vand.u32 4294901760, %v832_v10 }
 0x1ae   :  { %v461_v27 = vadd.f32 %v460_v25, %v426_v18  ;;  %v838_v16 = vsub.f32 %v836_v7, %v837_v11  ;;  %v843_v17 = vand.u32 4294901760, %v842_v12  ;;  %v848_v18 = vsub.f32 %v44_v9, %v806_v13 }
 0x1b0   :  { %v494_v30 = vadd.f32 %v493_v29, %v461_v27  ;;  %v844_v20 = vsub.f32 %v842_v12, %v843_v17  ;;  %v42_v27 = vld [vmem:[%s1594_s2 + $0x10] sm:$0xff] }
 0x1b1   :  { %v526_v22 = vpop.f32.mrf.mxu2  ;;  %v559_v35 = vpop.f32.mrf.mxu3 }
 0x1b2   :  { %v527_v23 = vadd.f32 %v526_v22, %v488_v19  ;;  %v839_v19 = vand.u32 4294901760, %v838_v16  ;;  %v845_v22 = vand.u32 4294901760, %v844_v20 }
 0x1b4   :  { %v556_v26 = vadd.f32 %v555_v21, %v527_v23  ;;  %v849_v21 = vand.u32 4294901760, %v848_v18 }
 0x1b6   :  { %1270 = vtanh.f32 %v556_v26  ;;  %v850_v23 = vsub.f32 %v848_v18, %v849_v21 }
 0x1b8   :  { %v851_v25 = vand.u32 4294901760, %v850_v23 }
 0x1b9   :  { %v530_v31 = vpop.f32.mrf.mxu2 }
 0x1ba   :  { %v531_v33 = vadd.f32 %v530_v31, %v494_v30  ;;  %v1534_v31 = vand.u32 4294901760, %v42_v27 }
 0x1bc   :  { %v1271_v36 = vpop.eup %1270  ;;  %v560_v37 = vadd.f32 %v559_v35, %v531_v33  ;;  %v40_v33 = vld [vmem:[%s1594_s2] sm:$0xff] }
 0x1bd   :  { %v574_v40 = vmul.f32 %v1271_v36, %v567_v38  ;;  %v1544_v35 = vand.u32 4294901760, %v40_v33  ;;  %v1548_v36 = vsub.f32 %v42_v27, %v1534_v31 }
 0x1be   :  { %1272 = vtanh.f32 %v560_v37  ;;  %v1552_v37 = vsub.f32 %v41_v32, %v1542_v34 }
 0x1bf   :  { %v611_v43 = vand.u32 4294901760, %v574_v40  ;;  %v1557_v38 = vsub.f32 %v40_v33, %v1544_v35 }
 0x1c1   :  { %v651_v47 = vsub.f32 %v574_v40, %v611_v43 }
 0x1c3   :  { %v652_v55 = vand.u32 4294901760, %v651_v47 }
 0x1c4   :  { %v1273_v45 = vpop.eup %1272 }
 0x1c5   :  { %v575_v48 = vmul.f32 %v1273_v45, %v572_v24  ;;  %v653_v59 = vsub.f32 %v651_v47, %v652_v55  ;;  %v43_v24 = vld [vmem:[%s1594_s2 + $0x18] sm:$0xff] }
 0x1c6   :  { %v1525_v26 = vand.u32 4294901760, %v43_v24 }
 0x1c7   :  { %v609_v50 = vand.u32 4294901760, %v575_v48  ;;  %v654_v62 = vand.u32 4294901760, %v653_v59 }
 0x1c8   :  { %v1531_v30 = vsub.f32 %v43_v24, %v1525_v26 }
 0x1c9   :  { %610 = vmatpush.msrb.mxu0 %v609_v50  ;;  %711 = vmatpush.msrb.mxu3 %v609_v50  ;;  %v645_v53 = vsub.f32 %v575_v48, %v609_v50 }
 0x1cb   :  { %612 = vmatpush.msrb.mxu0 %v611_v43  ;;  %681 = vmatpush.msrb.mxu2 %v645_v53  ;;  %v646_v57 = vand.u32 4294901760, %v645_v53 }
 0x1cc   :  { %713 = vmatpush.msrb.mxu3 %v611_v43  ;;  %618 = vmatmul.f32.vlgmr.msrb.gmra.mxu0 %v617_v51 }
 0x1cd   :  { %684 = vmatpush.msrb.mxu2 %v651_v47  ;;  %744 = vmatpush.msra.mxu0 %v646_v57  ;;  %v647_v58 = vsub.f32 %v645_v53, %v646_v57  ;;  %v1025_v57 = vand.u32 4294901760, %v1548_v36 }
 0x1ce   :  { %687 = vmatmul.f32.vlgmr.msrb.gmra.mxu2 %v614_v39  ;;  %717 = vmatmul.f32.vlgmr.msrb.gmra.mxu3 %v615_v42 }
 0x1cf   :  { %748 = vmatpush.msra.mxu0 %v652_v55  ;;  %v648_v61 = vand.u32 4294901760, %v647_v58  ;;  %801 = vmatpush.msra.mxu2 %v800_v1  ;;  %v1026_v0 = vsub.f32 %v1548_v36, %v1025_v57 }
 0x1d0   :  { %834 = vmatpush.msra.mxu3 %v833_v15 }
 0x1d1   :  { %649 = vmatpush.msrb.mxu1 %v648_v61  ;;  %803 = vmatpush.msra.mxu2 %v802_v4  ;;  %v1031_v61 = vand.u32 4294901760, %v1552_v37 }
 0x1d2   :  { %930 = vmatpush.msrb.mxu0 %v831_v6  ;;  %840 = vmatpush.msra.mxu3 %v839_v19 }
 0x1d3   :  { %655 = vmatpush.msrb.mxu1 %v654_v62  ;;  %805 = vmatpush.msra.mxu2 %v804_v8  ;;  %v1032_v5 = vsub.f32 %v1552_v37, %v1031_v61 }
 0x1d4   :  { %626 = vmatmul.f32.gmra.mxu0 %v625_v63  ;;  %1249 = vmatmul.msk.f32.vlgmr.msrb.gmra.mxu1 %vm588_vm5, %v1247_v28 }
 0x1d5   :  { %773 = vmatpush.msra.mxu1 %v609_v50  ;;  %934 = vmatpush.msrb.mxu0 %v837_v11  ;;  %v1019_v50 = vand.u32 4294901760, %v1531_v30  ;;  %v1033_v11 = vand.u32 4294901760, %v1032_v5 }
 0x1d6   :  { %692 = vmatmul.f32.gmra.mxu2 %v622_v49  ;;  %723 = vmatmul.f32.gmra.mxu3 %v623_v56 }
 0x1d7   :  { %775 = vmatpush.msra.mxu1 %v611_v43  ;;  %807 = vmatpush.msra.mxu2 %v806_v13  ;;  %v1020_v60 = vsub.f32 %v1531_v30, %v1019_v50 }
 0x1d8   :  { %938 = vmatpush.msrb.mxu0 %v843_v17  ;;  %846 = vmatpush.msra.mxu3 %v845_v22 }
 0x1d9   :  { %961 = vmatpush.msrb.mxu1 %v800_v1  ;;  %872 = vmatpush.msrb.mxu2 %v830_v3 }
 0x1da   :  { %942 = vmatpush.msrb.mxu0 %v849_v21  ;;  %852 = vmatpush.msra.mxu3 %v851_v25 }
 0x1db   :  { %963 = vmatpush.msrb.mxu1 %v802_v4  ;;  %875 = vmatpush.msrb.mxu2 %v836_v7 }
 0x1dc   :  { %1250 = vmatmul.msk.f32.gmra.mxu1 %vm588_vm5, %v1248_v41  ;;  %1251 = vmatmul.msk.f32.vlgmr.msra.gmra.mxu0 %vm588_vm5, %v1247_v28 }
 0x1dd   :  { %965 = vmatpush.msrb.mxu1 %v804_v8  ;;  %878 = vmatpush.msrb.mxu2 %v842_v12 }
 0x1de   :  { %901 = vmatpush.msrb.mxu3 %v800_v1  ;;  %1060 = vmatpush.msra.mxu0 %v1531_v30  ;;  %v1037_v1 = vand.u32 4294901760, %v1557_v38 }
 0x1df   :  { %967 = vmatpush.msrb.mxu1 %v806_v13  ;;  %881 = vmatpush.msrb.mxu2 %v848_v18 }
 0x1e0   :  { %903 = vmatpush.msrb.mxu3 %v802_v4  ;;  %1063 = vmatpush.msra.mxu0 %v1548_v36  ;;  %v1021_v4 = vand.u32 4294901760, %v1020_v60  ;;  %v1038_v9 = vsub.f32 %v1557_v38, %v1037_v1  ;;  %v1323_v60 = vmov 8.0  }
 0x1e2   :  { %905 = vmatpush.msrb.mxu3 %v804_v8  ;;  %1066 = vmatpush.msra.mxu0 %v1552_v37  ;;  %v1027_v8 = vand.u32 4294901760, %v1026_v0 }
 0x1e4   :  { %1252 = vmatmul.msk.f32.gmra.mxu0 %vm588_vm5, %v1248_v41  ;;  %1253 = vmatmul.msk.f32.vlgmr.msra.gmra.mxu1 %vm588_vm5, %v1247_v28 }
 0x1e5   :  { %1089 = vmatpush.msra.mxu1 %v1525_v26  ;;  %907 = vmatpush.msrb.mxu3 %v806_v13 }
 0x1e6   :  { %1069 = vmatpush.msra.mxu0 %v1557_v38 }
 0x1e7   :  { %1091 = vmatpush.msra.mxu1 %v1534_v31 }
 0x1e9   :  { %1093 = vmatpush.msra.mxu1 %v1542_v34 }
 0x1eb   :  { %1095 = vmatpush.msra.mxu1 %v1544_v35 }
 0x1ec   :  { %1254 = vmatmul.msk.f32.gmra.mxu1 %vm588_vm5, %v1248_v41 }
 0x249   :  { %v619_v14 = vpop.f32.mrf.mxu0 }
 0x251   :  { %v627_v28 = vpop.f32.mrf.mxu0  ;;  %v658_v29 = vpop.f32.mrf.mxu1 }
 0x252   :  { %v688_v39 = vpop.f32.mrf.mxu2  ;;  %v659_v41 = vadd.f32 %v658_v29, %v619_v14  ;;  %v718_v42 = vpop.f32.mrf.mxu3  ;;  %v1039_v14 = vand.u32 4294901760, %v1038_v9 }
 0x254   :  { %v689_v45 = vadd.f32 %v688_v39, %v659_v41  ;;  %v1178_v39 = vpop.permute.xlu1 %1177 }
 0x255   :  { %vm1179_vm7 = vcmp.eq.s32.totalorder %v1178_v39, %v1452_v52 }
 0x256   :  { %v719_v49 = vadd.f32 %v718_v42, %v689_v45  ;;  %v1269_v42 = vld [vmem:[%s1594_s2 + $0x40] ss:$0 sm:$0xff] }
 0x259   :  { %v662_v40 = vpop.f32.mrf.mxu1  ;;  %v751_v43 = vpop.f32.mrf.mxu0 }
 0x25a   :  { %v663_v44 = vadd.f32 %v662_v40, %v627_v28  ;;  %v693_v46 = vpop.f32.mrf.mxu2  ;;  %v752_v51 = vadd.f32 %v751_v43, %v719_v49  ;;  %v724_v53 = vpop.f32.mrf.mxu3 }
 0x25c   :  { %v694_v48 = vadd.f32 %v693_v46, %v663_v44  ;;  %v1255_v46 = vsel %vm1179_vm7, 1.0, %v1321_v54 }
 0x25e   :  { %v725_v56 = vadd.f32 %v724_v53, %v694_v48 }
 0x261   :  { %v778_v47 = vpop.f32.mrf.mxu1  ;;  %v755_v55 = vpop.f32.mrf.mxu0 }
 0x262   :  { %v779_v58 = vadd.f32 %v778_v47, %v752_v51  ;;  %v756_v59 = vadd.f32 %v755_v55, %v725_v56 }
 0x264   :  { %v974_v2 = vsel %vm339_vm3, %v779_v58, 0 }
 0x265   :  { %v996_v7 = vand.u32 4294901760, %v974_v2 }
 0x267   :  { %v997_v13 = vsub.f32 %v974_v2, %v996_v7 }
 0x269   :  { %v782_v62 = vpop.f32.mrf.mxu1  ;;  %v998_v17 = vand.u32 4294901760, %v997_v13 }
 0x26a   :  { %v783_v63 = vadd.f32 %v782_v62, %v756_v59 }
 0x26b   :  { %v999_v18 = vsub.f32 %v997_v13, %v998_v17 }
 0x26c   :  { %v786_v3 = vsel %vm339_vm3, %v783_v63, 0 }
 0x26d   :  { %v808_v6 = vand.u32 4294901760, %v786_v3  ;;  %v1000_v19 = vand.u32 4294901760, %v999_v18 }
 0x26f   :  { %v809_v10 = vsub.f32 %v786_v3, %v808_v6  ;;  %854 = vmatmul.f32.vlgmr.msra.gmra.mxu3 %v808_v6  ;;  %944 = vmatmul.f32.vlgmr.msrb.gmra.mxu0 %v808_v6 }
 0x270   :  { %969 = vmatmul.f32.vlgmr.msrb.gmra.mxu1 %v808_v6  ;;  %1022 = vmatpush.msra.mxu3 %v1021_v4 }
 0x271   :  { %v810_v12 = vand.u32 4294901760, %v809_v10 }
 0x272   :  { %1028 = vmatpush.msra.mxu3 %v1027_v8 }
 0x273   :  { %v811_v15 = vsub.f32 %v809_v10, %v810_v12 }
 0x274   :  { %1034 = vmatpush.msra.mxu3 %v1033_v11 }
 0x275   :  { %v812_v16 = vand.u32 4294901760, %v811_v15 }
 0x276   :  { %1040 = vmatpush.msra.mxu3 %v1039_v14 }
 0x277   :  { %813 = vmatmul.f32.vlgmr.msra.gmra.mxu2 %v812_v16  ;;  %911 = vmatmul.f32.vlgmr.msrb.gmra.mxu3 %v810_v12 }
 0x278   :  { %1072 = vmatmul.f32.vlgmr.msra.gmra.mxu0 %v997_v13  ;;  %1099 = vmatmul.f32.vlgmr.msra.gmra.mxu1 %v998_v17 }
 0x279   :  { %989 = vmatpush.msra.mxu2 %v1525_v26  ;;  %1149 = vmatpush.msrb.mxu3 %v1525_v26 }
 0x27b   :  { %991 = vmatpush.msra.mxu2 %v1534_v31  ;;  %1151 = vmatpush.msrb.mxu3 %v1534_v31 }
 0x27d   :  { %993 = vmatpush.msra.mxu2 %v1542_v34  ;;  %1153 = vmatpush.msrb.mxu3 %v1542_v34 }
 0x27f   :  { %884 = vmatmul.f32.vlgmr.msrb.gmra.mxu2 %v809_v10  ;;  %1042 = vmatmul.f32.vlgmr.msra.gmra.mxu3 %v996_v7 }
 0x280   :  { %995 = vmatpush.msra.mxu2 %v1544_v35  ;;  %1155 = vmatpush.msrb.mxu3 %v1544_v35 }
 0x282   :  { %1118 = vmatpush.msrb.mxu2 %v1019_v50 }
 0x284   :  { %1122 = vmatpush.msrb.mxu2 %v1025_v57 }
 0x286   :  { %1126 = vmatpush.msrb.mxu2 %v1031_v61 }
 0x287   :  { %1001 = vmatmul.f32.vlgmr.msra.gmra.mxu2 %v1000_v19  ;;  %1157 = vmatmul.f32.vlgmr.msrb.gmra.mxu3 %v996_v7 }
 0x288   :  { %1130 = vmatpush.msrb.mxu2 %v1037_v1 }
 0x28f   :  { %1132 = vmatmul.f32.vlgmr.msrb.gmra.mxu2 %v996_v7 }
 0x2ec   :  { %v945_v26 = vpop.f32.mrf.mxu0 }
 0x2ed   :  { %v970_v28 = vpop.f32.mrf.mxu1 }
 0x2f2   :  { %v855_v20 = vpop.f32.mrf.mxu3 }
 0x2f5   :  { %v1073_v35 = vpop.f32.mrf.mxu0  ;;  %v1100_v37 = vpop.f32.mrf.mxu1 }
 0x2fa   :  { %v814_v21 = vpop.f32.mrf.mxu2  ;;  %v912_v22 = vpop.f32.mrf.mxu3 }
 0x2fb   :  { %v856_v23 = vadd.f32 %v855_v20, %v814_v21 }
 0x302   :  { %v885_v24 = vpop.f32.mrf.mxu2  ;;  %v1043_v31 = vpop.f32.mrf.mxu3 }
 0x303   :  { %v886_v25 = vadd.f32 %v885_v24, %v856_v23 }
 0x305   :  { %v913_v27 = vadd.f32 %v912_v22, %v886_v25 }
 0x307   :  { %v946_v29 = vadd.f32 %v945_v26, %v913_v27 }
 0x309   :  { %v971_v30 = vadd.f32 %v970_v28, %v946_v29 }
 0x30a   :  { %v1002_v32 = vpop.f32.mrf.mxu2  ;;  %v1158_v43 = vpop.f32.mrf.mxu3 }
 0x30b   :  { %v1003_v33 = vadd.f32 %v1002_v32, %v971_v30 }
 0x30d   :  { %v1044_v34 = vadd.f32 %v1043_v31, %v1003_v33 }
 0x30f   :  { %v1074_v36 = vadd.f32 %v1073_v35, %v1044_v34 }
 0x311   :  { %v1101_v38 = vadd.f32 %v1100_v37, %v1074_v36 }
 0x312   :  { %v1133_v40 = vpop.f32.mrf.mxu2 }
 0x313   :  { %v1134_v41 = vadd.f32 %v1133_v40, %v1101_v38 }
 0x315   :  { %v1159_v44 = vadd.f32 %v1158_v43, %v1134_v41 }
 0x317   :  { %v1162_v45 = vadd.f32 %v1269_v42, %v1159_v44 }
 0x319   :  { %1163 = vst [vmem:[#allocation2] sm:$0xff] %v1162_v45  ;;  %v1165_v47 = vsel %vm1164_vm8, %v1162_v45, -1e+30  ;;  %v1182_v48 = vmul.f32 %v1255_v46, %v1162_v45 }
 0x31a   :  { %1166 = vmax.xlane.f32.xlu0 %v1165_v47  ;;  %1218 = dma.vmem_to_hbm [thread:$0]  %s1214_s22, 128, %s1216_s20, [#allocation3]  }
 0x31b   :  { %1183 = vadd.xlane.f32.xlu1 %v1182_v48 }
 0x38d   :  { %v1167_v49 = vpop.xlane.xlu0 %1166 }
 0x38e   :  { %v1168_v50 = vsub.f32 %v1165_v47, %v1167_v49  ;;  %v1184_v52 = vpop.xlane.xlu1 %1183 }
 0x390   :  { %v1169_v51 = vmul.f32 1.442695, %v1168_v50 }
 0x392   :  { %1274 = vpow2.f32 %v1169_v51 }
 0x398   :  { %v1275_v53 = vpop.eup %1274 }
 0x399   :  { %1171 = vadd.xlane.f32.xlu2 %v1275_v53 }
 0x40c   :  { %v1172_v55 = vpop.xlane.xlu2 %1171 }
 0x40d   :  { %1276 = vlog2.f32 %v1172_v55 }
 0x40e   :  { %1278 = vrcp.f32 %v1323_v60 }
 0x413   :  { %v1277_v56 = vpop.eup %1276 }
 0x414   :  { %v1174_v57 = vmul.f32 0.6931472, %v1277_v56  ;;  %v1279_v61 = vpop.eup %1278 }
 0x415   :  { %v1198_v62 = vmul.f32 8.0, %v1279_v61  ;;  %vm1202_vm10 = vweird.f32 %v1279_v61 }
 0x416   :  { %v1175_v58 = vadd.f32 %v1174_v57, %v1167_v49 }
 0x417   :  { %v1199_v63 = vsub.f32 1.0, %v1198_v62 }
 0x418   :  { %v1185_v59 = vsub.f32 %v1175_v58, %v1184_v52 }
 0x419   :  { %v1200_v3 = vmul.f32 %v1279_v61, %v1199_v63 }
 0x41a   :  { %v1187_v54 = vsel %vm1186_vm9, %v1185_v59, 0.0 }
 0x41b   :  { %1188 = vadd.xlane.f32.xlu2 %v1187_v54  ;;  %v1201_v6 = vadd.f32 %v1279_v61, %v1200_v3 }
 0x41d   :  { %v1203_v9 = vsel %vm1202_vm10, %v1279_v61, %v1201_v6 }
 0x48e   :  { %v1189_v0 = vpop.xlane.xlu2 %1188 }
 0x48f   :  { %v1190_v1 = vrot.slane %v1189_v0, 4 }
 0x491   :  { %v1191_v2 = vadd.f32 %v1190_v1, %v1189_v0 }
 0x493   :  { %v1192_v4 = vrot.slane %v1191_v2, 2 }
 0x495   :  { %v1193_v5 = vadd.f32 %v1192_v4, %v1191_v2 }
 0x497   :  { %v1194_v7 = vrot.slane %v1193_v5, 1 }
 0x499   :  { %v1195_v8 = vadd.f32 %v1194_v7, %v1193_v5 }
 0x49b   :  { %1256 = vpush %v1195_v8 }
 0x49c   :  { %1258 = vpush %v1203_v9 }
 0x4cc   :  { %s1257_s25 = spop %1256 }
 0x4cd   :  { %s1259_s26 = spop %1258 }
 0x4ce   :  { %s1205_s27 = smul.f32 %s1259_s26, %s1257_s25 }
 0x4d0   :  { %1207 = sst [smem:[#allocation5]] %s1205_s27 }
 0x4d1   :  { %1227 = dma.smem_to_hbm %s1324_s28, 16, %s1225_s24, [#allocation4]  }
 0x4d2   :  { %1316 = dma.done.wait [#allocation3], 128  }
 0x4d3   :  { %1317 = vsyncadd [#allocation3], 4294967168 }
 0x4d4   :  { %1318 = dma.done.wait [#allocation4], 16  }
 0x4d5   :  { %1319 = vsyncadd [#allocation4], 4294967280 }
 0x4d6   :  { %1236 = sfence }
 0x4d7   :  { %1237 = vsyncpa [#allocation3], 1 }
 0x4d8   :  { %1238 = vsyncpa [#allocation4], 1 }

</bundles_post_ra>
